<compile_context>
chip_gen: v7x
topology: tpu7x:2x2x1
jax: 0.10.0
libtpu: 0.0.40
codegen_flags: <defaults>
</compile_context>

<pallas_src>
import jax
import jax.numpy as jnp
from jax.experimental import pallas as pl
from jax.experimental.pallas import tpu as pltpu


def pixel_mlp_kernel(x_ref, w1t_ref, b1_ref, w2t_ref, b2_ref, o_ref):
    # x_ref:   (C_in,  TP)    compute dtype (bf16 by default)
    # w1t_ref: (C_hid, C_in)  f32       b1_ref: (C_hid, 1) f32
    # w2t_ref: (C_out, C_hid) compute   b2_ref: (C_out, 1) f32
    # o_ref:   (C_out, TP)    output dtype
    c_in = x_ref.shape[0]
    x = x_ref[...].astype(jnp.float32)            # (C_in, TP)
    w1t = w1t_ref[...]                            # (C_hid, C_in), f32

    # ---- layer 1: K = C_in is tiny -> unrolled VPU broadcast-FMA (no MXU) --
    h = w1t[:, 0:1] * x[0:1, :]                   # (C_hid, TP)
    for c in range(1, c_in):
        h = h + w1t[:, c:c + 1] * x[c:c + 1, :]
    h = jnp.maximum(h + b1_ref[...], 0.0)         # bias-add + ReLU in f32

    # ---- layer 2: K = C_hid -> MXU matmul with f32 accumulation ------------
    y = jnp.dot(w2t_ref[...], h.astype(w2t_ref.dtype),
                preferred_element_type=jnp.float32)     # (C_out, TP)
    o_ref[...] = (y + b2_ref[...]).astype(o_ref.dtype)  # lane-dense store


def pixel_mlp_pallas(x_nchw, w1, b1, w2, b2, *, tile_p=2048,
                     compute_dtype=jnp.bfloat16):
    """x_nchw: (N, C_in, H, W); w1: (C_in, C_hid); b1: (C_hid,);
    w2: (C_hid, C_out); b2: (C_out,).  Returns (N, C_out, H, W)."""
    N, C_in, H, W = x_nchw.shape
    C_hid = w1.shape[1]
    C_out = w2.shape[1]
    P = H * W
    out_dtype = x_nchw.dtype

    # Channel-major pixel matrix: FREE reshape (no data movement).
    x = x_nchw.reshape(N, C_in, P)

    # Lane-aligned pixel tile; pad the ragged tail rather than asserting
    # divisibility.  With C<=32, a 2048-pixel tile is <1 MiB total, far below
    # even v7x's 64 MiB VMEM when double-buffered.
    tp = min(int(tile_p), pl.cdiv(P, 128) * 128)
    tp = pl.cdiv(tp, 128) * 128
    P_pad = pl.cdiv(P, tp) * tp
    if P_pad != P:
        x = jnp.pad(x, ((0, 0), (0, 0), (0, P_pad - P)))

    # bf16 activation / 2nd-layer-weight path (f32 accumulation in-kernel).
    # In a full model the activations would already arrive in bf16.
    x = x.astype(compute_dtype)
    w1t = jnp.asarray(w1, jnp.float32).T                # (C_hid, C_in), VPU layer
    w2t = jnp.asarray(w2, compute_dtype).T              # (C_out, C_hid), MXU layer
    b1_2d = jnp.asarray(b1, jnp.float32).reshape(C_hid, 1)
    b2_2d = jnp.asarray(b2, jnp.float32).reshape(C_out, 1)

    grid = (N, P_pad // tp)
    out_flat = pl.pallas_call(
        pixel_mlp_kernel,
        out_shape=jax.ShapeDtypeStruct((N, C_out, P_pad), out_dtype),
        grid_spec=pltpu.PrefetchScalarGridSpec(
            num_scalar_prefetch=0,
            grid=grid,
            in_specs=[
                pl.BlockSpec((None, C_in, tp), lambda n, p: (n, 0, p)),
                pl.BlockSpec((C_hid, C_in), lambda n, p: (0, 0)),
                pl.BlockSpec((C_hid, 1), lambda n, p: (0, 0)),
                pl.BlockSpec((C_out, C_hid), lambda n, p: (0, 0)),
                pl.BlockSpec((C_out, 1), lambda n, p: (0, 0)),
            ],
            out_specs=pl.BlockSpec((None, C_out, tp), lambda n, p: (n, 0, p)),
        ),
        compiler_params=pltpu.CompilerParams(
            dimension_semantics=("parallel", "parallel"),
            vmem_limit_bytes=32 * 1024 * 1024,
        ),
    )(x, w1t, b1_2d, w2t, b2_2d)

    if P_pad != P:
        out_flat = out_flat[:, :, :P]
    return out_flat.reshape(N, C_out, H, W)   # already NCHW: free reshape


def pixel_mlp_ref(x_nchw, w1, b1, w2, b2):
    # Pure-JAX f32 reference of the same math (1x1 conv == channel matmul).
    x = jnp.transpose(x_nchw, (0, 2, 3, 1))            # NHWC
    h = jnp.maximum(jnp.einsum("nhwc,cd->nhwd", x, w1) + b1, 0.0)
    y = jnp.einsum("nhwd,do->nhwo", h, w2) + b2
    return jnp.transpose(y, (0, 3, 1, 2))              # NCHW


if __name__ == "__main__":
    # Small shapes consistent with the module: batch=2, in_channels=4,
    # spatial=16x16, hidden_channels=32, out_channels=8.
    N, C_in, H, W = 2, 4, 16, 16
    C_hid, C_out = 32, 8

    key = jax.random.PRNGKey(0)
    kx, kw1, kb1, kw2, kb2 = jax.random.split(key, 5)

    x = jax.random.normal(kx, (N, C_in, H, W), dtype=jnp.float32)
    # Conv2d(in, hid, 1) weight has shape (hid, in, 1, 1); we store the
    # squeezed+transposed (in, hid) matmul form directly (deterministic init).
    w1 = jax.random.normal(kw1, (C_in, C_hid), dtype=jnp.float32) * 0.1
    b1 = jax.random.normal(kb1, (C_hid,), dtype=jnp.float32) * 0.1
    w2 = jax.random.normal(kw2, (C_hid, C_out), dtype=jnp.float32) * 0.1
    b2 = jax.random.normal(kb2, (C_out,), dtype=jnp.float32) * 0.1

    out = pixel_mlp_pallas(x, w1, b1, w2, b2)
    out = jax.block_until_ready(out)

    ref = pixel_mlp_ref(x, w1, b1, w2, b2)
    assert out.shape == (N, C_out, H, W)
    # bf16 activation path -> tolerance loosened vs the f32 reference.
    assert jnp.allclose(out, ref, atol=2e-2, rtol=2e-2)

    print("KERNEL_OK")
</pallas_src>

<mosaic_0001>
module attributes {stable_mosaic.version = 11 : i64} {
  func.func @pixel_mlp_kernel(%arg0: i32, %arg1: i32, %arg2: memref<1x4x256xbf16, #tpu.memory_space<vmem>>, %arg3: memref<32x4xf32, #tpu.memory_space<vmem>>, %arg4: memref<32x1xf32, #tpu.memory_space<vmem>>, %arg5: memref<8x32xbf16, #tpu.memory_space<vmem>>, %arg6: memref<8x1xf32, #tpu.memory_space<vmem>>, %arg7: memref<1x8x256xf32, #tpu.memory_space<vmem>>) attributes {dimension_semantics = [#tpu.dimension_semantics<parallel>, #tpu.dimension_semantics<parallel>], iteration_bounds = array<i64: 2, 1>, scalar_prefetch = 0 : i64, scratch_operands = 0 : i64, tpu.core_type = #tpu.core_type<tc>, window_params = [{transform_indices = @transform_0, window_bounds = array<i64: 1, 4, 256>}, {pipeline_mode = #tpu.pipeline_mode<synchronous>, transform_indices = @transform_1, window_bounds = array<i64: 32, 4>}, {pipeline_mode = #tpu.pipeline_mode<synchronous>, transform_indices = @transform_2, window_bounds = array<i64: 32, 1>}, {pipeline_mode = #tpu.pipeline_mode<synchronous>, transform_indices = @transform_3, window_bounds = array<i64: 8, 32>}, {pipeline_mode = #tpu.pipeline_mode<synchronous>, transform_indices = @transform_4, window_bounds = array<i64: 8, 1>}, {transform_indices = @transform_5, window_bounds = array<i64: 1, 8, 256>}]} {
    %c0 = arith.constant 0 : index
    %c0_0 = arith.constant 0 : index
    %c0_1 = arith.constant 0 : index
    %0 = vector.load %arg2[%c0, %c0_0, %c0_1] : memref<1x4x256xbf16, #tpu.memory_space<vmem>>, vector<1x4x256xbf16>
    %1 = vector.shape_cast %0 : vector<1x4x256xbf16> to vector<4x256xbf16>
    %2 = arith.extf %1 : vector<4x256xbf16> to vector<4x256xf32>
    %c0_2 = arith.constant 0 : index
    %c0_3 = arith.constant 0 : index
    %3 = vector.load %arg3[%c0_2, %c0_3] : memref<32x4xf32, #tpu.memory_space<vmem>>, vector<32x4xf32>
    %4 = vector.extract_strided_slice %3 {offsets = [0, 0], sizes = [32, 1], strides = [1, 1]} : vector<32x4xf32> to vector<32x1xf32>
    %5 = vector.extract_strided_slice %2 {offsets = [0, 0], sizes = [1, 256], strides = [1, 1]} : vector<4x256xf32> to vector<1x256xf32>
    %6 = vector.broadcast %4 : vector<32x1xf32> to vector<32x256xf32>
    %7 = vector.broadcast %5 : vector<1x256xf32> to vector<32x256xf32>
    %8 = arith.mulf %6, %7 : vector<32x256xf32>
    %9 = vector.extract_strided_slice %3 {offsets = [0, 1], sizes = [32, 1], strides = [1, 1]} : vector<32x4xf32> to vector<32x1xf32>
    %10 = vector.extract_strided_slice %2 {offsets = [1, 0], sizes = [1, 256], strides = [1, 1]} : vector<4x256xf32> to vector<1x256xf32>
    %11 = vector.broadcast %9 : vector<32x1xf32> to vector<32x256xf32>
    %12 = vector.broadcast %10 : vector<1x256xf32> to vector<32x256xf32>
    %13 = arith.mulf %11, %12 : vector<32x256xf32>
    %14 = arith.addf %8, %13 : vector<32x256xf32>
    %15 = vector.extract_strided_slice %3 {offsets = [0, 2], sizes = [32, 1], strides = [1, 1]} : vector<32x4xf32> to vector<32x1xf32>
    %16 = vector.extract_strided_slice %2 {offsets = [2, 0], sizes = [1, 256], strides = [1, 1]} : vector<4x256xf32> to vector<1x256xf32>
    %17 = vector.broadcast %15 : vector<32x1xf32> to vector<32x256xf32>
    %18 = vector.broadcast %16 : vector<1x256xf32> to vector<32x256xf32>
    %19 = arith.mulf %17, %18 : vector<32x256xf32>
    %20 = arith.addf %14, %19 : vector<32x256xf32>
    %21 = vector.extract_strided_slice %3 {offsets = [0, 3], sizes = [32, 1], strides = [1, 1]} : vector<32x4xf32> to vector<32x1xf32>
    %22 = vector.extract_strided_slice %2 {offsets = [3, 0], sizes = [1, 256], strides = [1, 1]} : vector<4x256xf32> to vector<1x256xf32>
    %23 = vector.broadcast %21 : vector<32x1xf32> to vector<32x256xf32>
    %24 = vector.broadcast %22 : vector<1x256xf32> to vector<32x256xf32>
    %25 = arith.mulf %23, %24 : vector<32x256xf32>
    %26 = arith.addf %20, %25 : vector<32x256xf32>
    %c0_4 = arith.constant 0 : index
    %c0_5 = arith.constant 0 : index
    %27 = vector.load %arg4[%c0_4, %c0_5] : memref<32x1xf32, #tpu.memory_space<vmem>>, vector<32x1xf32>
    %28 = vector.broadcast %27 : vector<32x1xf32> to vector<32x256xf32>
    %29 = arith.addf %26, %28 : vector<32x256xf32>
    %cst = arith.constant 0.000000e+00 : f32
    %30 = vector.broadcast %cst : f32 to vector<32x256xf32>
    %31 = arith.maximumf %29, %30 : vector<32x256xf32>
    %c0_6 = arith.constant 0 : index
    %c0_7 = arith.constant 0 : index
    %32 = vector.load %arg5[%c0_6, %c0_7] : memref<8x32xbf16, #tpu.memory_space<vmem>>, vector<8x32xbf16>
    %33 = arith.truncf %31 : vector<32x256xf32> to vector<32x256xbf16>
    %cst_8 = arith.constant dense<0.000000e+00> : vector<8x256xf32>
    %34 = tpu.matmul %32, %33, %cst_8 {dimension_numbers = #tpu.dot_dimension_numbers<[1], [0], [0], [1], [0, 0, 1, 1], [], []>} : vector<8x32xbf16>, vector<32x256xbf16>, vector<8x256xf32> -> vector<8x256xf32>
    %c0_9 = arith.constant 0 : index
    %c0_10 = arith.constant 0 : index
    %35 = vector.load %arg6[%c0_9, %c0_10] : memref<8x1xf32, #tpu.memory_space<vmem>>, vector<8x1xf32>
    %36 = vector.broadcast %35 : vector<8x1xf32> to vector<8x256xf32>
    %37 = arith.addf %34, %36 : vector<8x256xf32>
    %c0_11 = arith.constant 0 : index
    %c0_12 = arith.constant 0 : index
    %c0_13 = arith.constant 0 : index
    %38 = vector.load %arg7[%c0_11, %c0_12, %c0_13] : memref<1x8x256xf32, #tpu.memory_space<vmem>>, vector<1x8x256xf32>
    %39 = vector.shape_cast %38 : vector<1x8x256xf32> to vector<8x256xf32>
    %40 = vector.shape_cast %37 : vector<8x256xf32> to vector<1x8x256xf32>
    tpu.vector_store %arg7[%c0_11, %c0_12, %c0_13], %40 {strides = array<i32>} : memref<1x8x256xf32, #tpu.memory_space<vmem>>, vector<1x8x256xf32>,
    return
  }
  func.func @transform_0(%arg0: i32, %arg1: i32) -> (i32, i32, i32) {
    %c0_i32 = arith.constant 0 : i32
    %c0_i32_0 = arith.constant 0 : i32
    return %arg0, %c0_i32, %arg1 : i32, i32, i32
  }
  func.func @transform_1(%arg0: i32, %arg1: i32) -> (i32, i32) {
    %c0_i32 = arith.constant 0 : i32
    %c0_i32_0 = arith.constant 0 : i32
    %c0_i32_1 = arith.constant 0 : i32
    return %c0_i32, %c0_i32_0 : i32, i32
  }
  func.func @transform_2(%arg0: i32, %arg1: i32) -> (i32, i32) {
    %c0_i32 = arith.constant 0 : i32
    %c0_i32_0 = arith.constant 0 : i32
    %c0_i32_1 = arith.constant 0 : i32
    return %c0_i32, %c0_i32_0 : i32, i32
  }
  func.func @transform_3(%arg0: i32, %arg1: i32) -> (i32, i32) {
    %c0_i32 = arith.constant 0 : i32
    %c0_i32_0 = arith.constant 0 : i32
    %c0_i32_1 = arith.constant 0 : i32
    return %c0_i32, %c0_i32_0 : i32, i32
  }
  func.func @transform_4(%arg0: i32, %arg1: i32) -> (i32, i32) {
    %c0_i32 = arith.constant 0 : i32
    %c0_i32_0 = arith.constant 0 : i32
    %c0_i32_1 = arith.constant 0 : i32
    return %c0_i32, %c0_i32_0 : i32, i32
  }
  func.func @transform_5(%arg0: i32, %arg1: i32) -> (i32, i32, i32) {
    %c0_i32 = arith.constant 0 : i32
    %c0_i32_0 = arith.constant 0 : i32
    return %arg0, %c0_i32, %arg1 : i32, i32, i32
  }
}

</mosaic_0001>

<bundles_post_ra>
// kernel: tpu_custom_call.1
= control target key start
LH: loop header
LB: loop body
LE: loop exit
PB: predicated region body
PF: predicated region fallthrough
CT: control target
= control target key end

     0   :  { %10 = vsyncpa [#allocation3], 0  ;;  %s996_s0 = inlined_call_operand.vmem [shape: bf16[2,4,256], index: 0, kind: input, shape index: {}]   ;;  %s997_s1 = inlined_call_operand.vmem [shape: f32[32,4], index: 1, kind: input, shape index: {}]   ;;  %s998_s2 = inlined_call_operand.vmem [shape: f32[32,1], index: 2, kind: input, shape index: {}]   ;;  %s999_s3 = inlined_call_operand.vmem [shape: bf16[8,32], index: 3, kind: input, shape index: {}]   ;;  %s1000_s4 = inlined_call_operand.vmem [shape: f32[8,1], index: 4, kind: input, shape index: {}]   ;;  %s1001_s5 = inlined_call_operand.hbm [shape: f32[2,8,256], index: 5, kind: output, shape index: {}]  }
   0x1   :  { %12 = vsyncpa [#allocation3 + $0x1], 0  ;;  %s850_s18 = smov 0   ;;  %s852_s19 = smov 0  }
   0x2   :  { %s854_s20 = smov 0   ;;  %s856_s21 = smov 0  }
   0x3   :  { %s858_s22 = smov 0   ;;  %s860_s23 = smov 0  }
   0x4 LB: > { %s649_s24 = sadd.s32 4294967295, %s813_s23   ;;  %s650_s25 = sadd.s32 4294967294, %s813_s23   ;;  %s813_s23 = sphi %s860_s23, %s18_s23   ;;  %s809_s22 = sphi %s858_s22, %s1008_s22   ;;  %s805_s21 = sphi %s856_s21, %s1007_s21   ;;  %s801_s20 = sphi %s854_s20, %s1006_s20   ;;  %s797_s19 = sphi %s852_s19, %s1005_s19   ;;  %s793_s18 = sphi %s850_s18, %s1004_s18  }
   0x5   : > { %s30_s26 = sadd.s32 1, %s809_s22  ;;  %s151_s27 = sadd.s32 1, %s801_s20 }
   0x6   : > { %p32_p0 = scmp.ge.s32.totalorder %s30_s26, 2  ;;  %p161_p1 = scmp.ne.s32.totalorder %s801_s20, %s797_s19 }
   0x7   : > { %p162_p2 = scmp.eq.s32.totalorder %s649_s24, 1  ;;  %p167_p3 = scmp.ne.s32.totalorder %s797_s19, %s793_s18 }
   0x8   : > { %s1010_s26 = smov (%p32_p0, %s30_s26), 0  ;;  %p168_p5 = scmp.eq.s32.totalorder %s650_s25, 1 }
   0x9   : > { %p890_p4 = por %p162_p2, %p161_p1  ;;  %s146_s29 = ssub.s32 %s809_s22, %s1010_s26 }
   0xa   : > { %p653_p6 = scmp.ge.s32.totalorder %s813_s23, 1  ;;  %p149_p7 = scmp.eq.s32.totalorder %s146_s29, 0 }
   0xb   : > { %p897_p8 = por %p168_p5, %p167_p3  ;;  %p211_p9 = scmp.lt.s32.totalorder %s813_s23, 3 }
   0xc   : > { %s903_s6 = scalar_select %p149_p7, %s801_s20, %s151_s27  }
   0xd   : > { %p212_p10 = pnand %p653_p6, %p211_p9 }
   0xe   : > { %v257_v0 = vld [vmem:[%s997_s1] sm:$0xff] (!%p212_p10)  ;;  %v815_v1 = vmov (!%p212_p10), 3   ;;  %v816_v2 = vmov (!%p212_p10), 1   ;;  %v258_v3 = vld [vmem:[%s997_s1 + $0x8] sm:$0xff] (!%p212_p10)  ;;  %v817_v4 = vmov (!%p212_p10), 0   ;;  %v818_v5 = vmov (!%p212_p10), 2  }
   0xf   : > { %215 = sbr.rel (%p212_p10) target bundleno = 434 (0x1b2), region = 40  ;;  %728 = vset.pattern.permute.xlu0 (!%p212_p10), %v815_v1  ;;  %724 = vset.pattern.permute.xlu1 (!%p212_p10), %v816_v2  ;;  %v260_v6 = vld [vmem:[%s997_s1 + $0x18] sm:$0xff] (!%p212_p10)  ;;  %v259_v7 = vld [vmem:[%s997_s1 + $0x10] sm:$0xff] (!%p212_p10)  ;;  %v458_v8 = vld [vmem:[%s998_s2] sm:$0xff] (!%p212_p10)  ;;  %p244_p11 = scmp.lt.s32.totalorder (!%p212_p10), %s805_s21, 1  ;;  %v282_v18 = vlaneseq (!%p212_p10)  ;;  %vm509_vm0 = vcmask (!%p212_p10), 261120  }
  0x10   : > { %409 = vperm.xlu0 (!%p212_p10), %728, %v257_v0   ;;  %309 = vperm.xlu1 (!%p212_p10), %724, %v257_v0   ;;  %v461_v9 = vld [vmem:[%s998_s2 + $0x18] sm:$0xff] (!%p212_p10)  ;;  %v459_v10 = vld [vmem:[%s998_s2 + $0x8] sm:$0xff] (!%p212_p10)  ;;  %v460_v11 = vld [vmem:[%s998_s2 + $0x10] sm:$0xff] (!%p212_p10)  ;;  %s240_s17 = sand.u32 (!%p212_p10), 1, %s797_s19   ;;  %s664_s25 = sshll.u32 (!%p212_p10), %s805_s21, 8 }
  0x11   : > { %545 = vmatprep.mubr.bf16.mxu0 (!%p212_p10), %v817_v4  ;;  %v503_v12 = vld [vmem:[%s1000_s4] sm:$0xff] (!%p212_p10)  ;;  %v283_v20 = vshrl.u32 (!%p212_p10), %v282_v18, 7  ;;  %s654_s24 = sshll.u32 (!%p212_p10), %s240_s17, 4  ;;  %s949_s9 = scalar_lea.hbm (!%p212_p10), %s1001_s5, %s664_s25 }
  0x12   : > { %s242_s27 = scalar_lea.vmem (!%p212_p10), [#allocation2], %s654_s24 }
  0x13   : > { %v284_v23 = vsub.s32 (!%p212_p10), 0, %v283_v20  ;;  %v288_v24 = vsub.s32 (!%p212_p10), 4, %v283_v20  ;;  %v326_v25 = vsub.s32 (!%p212_p10), 1, %v283_v20  ;;  %v330_v26 = vsub.s32 (!%p212_p10), 5, %v283_v20  ;;  %s573_s29 = sshll.u32 (!%p212_p10), %s242_s27, 4  ;;  %s951_s29 = int_to_ptr.vmem [resolvable:$true] %s573_s29 }
  0x14   : > { %729 = vset.pattern.permute.xlu0 (!%p212_p10), %v818_v5  ;;  %313 = vperm.xlu1 (!%p212_p10), %724, %v258_v3   ;;  %v376_v34 = vsub.s32 (!%p212_p10), 2, %v283_v20  ;;  %v380_v35 = vsub.s32 (!%p212_p10), 6, %v283_v20  ;;  %v426_v37 = vsub.s32 (!%p212_p10), 3, %v283_v20  ;;  %v430_v38 = vsub.s32 (!%p212_p10), 7, %v283_v20 }
  0x15   : > { %359 = vperm.xlu0 (!%p212_p10), %729, %v257_v0  }
  0x16   : > { %s245_s10 = scalar_select %p244_p11, %s805_s21, 1 }
  0x17   : > { %s557_s21 = scalar_lea.sflag [#allocation3], %s240_s17 }
  0x18   : > { %725 = vset.pattern.permute.xlu1 %v818_v5  ;;  %s663_s11 = sshll.u32 %s245_s10, 2  ;;  %s735_s10 = scalar_lea.vmem %s951_s29, 256 }
  0x19   : > { %371 = vperm.xlu0 %729, %v260_v6   ;;  %363 = vperm.xlu1 %725, %v258_v3   ;;  %s251_s14 = scalar_lea.vmem %s996_s0, %s663_s11  ;;  %p736_p12 = scmp.ne.s32.totalorder %s951_s29, %s735_s10 }
  0x1a   : > { %v255_v22 = vld [vmem:[%s251_s14] sm:$0xf]  ;;  %s819_s11 = smov [#allocation2]  }
  0x1b   : > { %v256_v27 = vunpack.c.l.bf16 %v255_v22  ;;  %p737_p13 = pnand %p736_p12, %p890_p4  ;;  %s739_s12 = sshll.u32 %s819_s11, 4  ;;  %s740_s12 = int_to_ptr.vmem [resolvable:$false] %s739_s12 }
  0x1c   : > { %s741_s13 = scalar_lea.vmem %s740_s12, 512  ;;  %p742_p1 = scmp.lt.s32.totalorder %s951_s29, %s740_s12 }
  0x1d   : > { %732 = vset.pattern.permute.xlu0 %v817_v4  ;;  %726 = vset.pattern.permute.xlu1 %v817_v4  ;;  %v285_v30 = vrot.slane %v256_v27, %v284_v23  ;;  %v289_v31 = vrot.slane %v256_v27, %v288_v24  ;;  %v327_v32 = vrot.slane %v256_v27, %v326_v25  ;;  %p738_p0 = pneg %p737_p13  ;;  %p743_p2 = scmp.lt.s32.totalorder %s741_s13, %s735_s10 }
  0x1e   : > { %263 = vperm.xlu0 %732, %v257_v0   ;;  %273 = vperm.xlu1 %726, %v259_v7   ;;  %v331_v33 = vrot.slane %v256_v27, %v330_v26  ;;  %v377_v43 = vrot.slane %v256_v27, %v376_v34  ;;  %v381_v44 = vrot.slane %v256_v27, %v380_v35 }
  0x1f   : > { %v295_v39 = vrot.slane %v285_v30, %v284_v23  ;;  %v299_v40 = vrot.slane %v289_v31, %v284_v23  ;;  %v337_v41 = vrot.slane %v327_v32, %v326_v25  ;;  %v427_v46 = vrot.slane %v256_v27, %v426_v37  ;;  %p744_p3 = por %p743_p2, %p742_p1 }
  0x20   : > { %v341_v42 = vrot.slane %v331_v33, %v326_v25  ;;  %v431_v47 = vrot.slane %v256_v27, %v430_v38  ;;  %v387_v53 = vrot.slane %v377_v43, %v376_v34  ;;  %v391_v54 = vrot.slane %v381_v44, %v376_v34 }
  0x21   : > { %v437_v55 = vrot.slane %v427_v46, %v426_v37  ;;  %p745_p5 = pnand %p744_p3, %p738_p0 }
  0x22   : > { %268 = vperm.xlu0 %732, %v258_v3   ;;  %727 = vset.pattern.permute.xlu1 %v816_v2  ;;  %v441_v56 = vrot.slane %v431_v47, %v426_v37 }
  0x23   : > { %317 = vperm.xlu1 %727, %v259_v7  }
  0x26   : > { %278 = vperm.xlu0 %732, %v260_v6  }
  0x27   : > { %321 = vperm.xlu1 %727, %v260_v6  }
  0x2a   : > { %464 = vperm.xlu0 %732, %v458_v8  }
  0x2b   : > { %730 = vset.pattern.permute.xlu1 %v815_v1 }
  0x2c   : > { %413 = vperm.xlu1 %730, %v258_v3  }
  0x2e   : > { %479 = vperm.xlu0 %732, %v461_v9  }
  0x30   : > { %731 = vset.pattern.permute.xlu1 %v818_v5 }
  0x31   : > { %367 = vperm.xlu1 %731, %v259_v7  }
  0x35   : > { %733 = vset.pattern.permute.xlu1 %v815_v1 }
  0x36   : > { %417 = vperm.xlu1 %733, %v259_v7  }
  0x3a   : > { %421 = vperm.xlu1 %733, %v260_v6  }
  0x3e   : > { %734 = vset.pattern.permute.xlu1 %v817_v4 }
  0x3f   : > { %469 = vperm.xlu1 %734, %v459_v10  }
  0x43   : > { %474 = vperm.xlu1 %734, %v460_v11  }
  0x47   : > { %506 = vperm.xlu1 %734, %v503_v12  }
  0x8f   : > { %v310_v13 = vpop.permute.xlu1 %309  ;;  %v410_v14 = vpop.permute.xlu0 %409 }
  0x90   : > { %v342_v51 = vmul.f32 %v337_v41, %v310_v13  ;;  %v343_v52 = vmul.f32 %v341_v42, %v310_v13  ;;  %v442_v5 = vmul.f32 %v437_v55, %v410_v14  ;;  %v443_v6 = vmul.f32 %v441_v56, %v410_v14 }
  0x93   : > { %v314_v15 = vpop.permute.xlu1 %313 }
  0x94   : > { %v360_v16 = vpop.permute.xlu0 %359  ;;  %v344_v9 = vmul.f32 %v337_v41, %v314_v15  ;;  %v345_v10 = vmul.f32 %v341_v42, %v314_v15 }
  0x95   : > { %v392_v57 = vmul.f32 %v387_v53, %v360_v16  ;;  %v393_v58 = vmul.f32 %v391_v54, %v360_v16 }
  0x98   : > { %v934_v17 = vpop.permute.xlu1 %363  ;;  %v372_v21 = vpop.permute.xlu0 %371 }
  0x99   : > { %v398_v16 = vmul.f32 %v387_v53, %v372_v21  ;;  %v399_v18 = vmul.f32 %v391_v54, %v372_v21  ;;  %v394_v27 = vmul.f32 %v387_v53, %v934_v17 }
  0x9d   : > { %v274_v19 = vpop.permute.xlu1 %273  ;;  %v264_v29 = vpop.permute.xlu0 %263 }
  0x9e   : > { %v300_v49 = vmul.f32 %v295_v39, %v264_v29  ;;  %v301_v50 = vmul.f32 %v299_v40, %v264_v29  ;;  %v304_v20 = vmul.f32 %v295_v39, %v274_v19  ;;  %v305_v22 = vmul.f32 %v299_v40, %v274_v19 }
  0x9f   : > { %v395_v29 = vmul.f32 %v391_v54, %v934_v17 }
  0xa0   : > { %v350_v59 = vadd.f32 %v342_v51, %v300_v49  ;;  %v351_v60 = vadd.f32 %v343_v52, %v301_v50 }
  0xa1   : > { %v269_v45 = vpop.permute.xlu0 %268 }
  0xa2   : > { %v318_v28 = vpop.permute.xlu1 %317  ;;  %v302_v63 = vmul.f32 %v295_v39, %v269_v45  ;;  %v303_v0 = vmul.f32 %v299_v40, %v269_v45  ;;  %v400_v7 = vadd.f32 %v392_v57, %v350_v59  ;;  %v401_v8 = vadd.f32 %v393_v58, %v351_v60 }
  0xa3   : > { %v346_v11 = vmul.f32 %v337_v41, %v318_v28  ;;  %v347_v12 = vmul.f32 %v341_v42, %v318_v28 }
  0xa4   : > { %v352_v23 = vadd.f32 %v344_v9, %v302_v63  ;;  %v353_v24 = vadd.f32 %v345_v10, %v303_v0  ;;  %v450_v14 = vadd.f32 %v442_v5, %v400_v7  ;;  %v451_v30 = vadd.f32 %v443_v6, %v401_v8  ;;  %v498_v9 = vld [vmem:[%s999_s3] sm:$0xf] }
  0xa5   : > { %v279_v61 = vpop.permute.xlu0 %278  ;;  %v354_v31 = vadd.f32 %v346_v11, %v304_v20  ;;  %v355_v32 = vadd.f32 %v347_v12, %v305_v22 }
  0xa6   : > { %v322_v36 = vpop.permute.xlu1 %321  ;;  %v306_v1 = vmul.f32 %v295_v39, %v279_v61  ;;  %v307_v2 = vmul.f32 %v299_v40, %v279_v61  ;;  %v402_v39 = vadd.f32 %v394_v27, %v352_v23  ;;  %v403_v40 = vadd.f32 %v395_v29, %v353_v24 }
  0xa7   : > { %v348_v3 = vmul.f32 %v337_v41, %v322_v36  ;;  %v349_v4 = vmul.f32 %v341_v42, %v322_v36 }
  0xa9   : > { %v356_v25 = vadd.f32 %v348_v3, %v306_v1  ;;  %v357_v26 = vadd.f32 %v349_v4, %v307_v2  ;;  %v465_v15 = vpop.permute.xlu0 %464 }
  0xaa   : > { %v482_v41 = vadd.f32 %v465_v15, %v450_v14  ;;  %v483_v42 = vadd.f32 %v465_v15, %v451_v30 }
  0xab   : > { %v414_v48 = vpop.permute.xlu1 %413  ;;  %v406_v37 = vadd.f32 %v398_v16, %v356_v25  ;;  %v407_v38 = vadd.f32 %v399_v18, %v357_v26 }
  0xac   : > { %v444_v33 = vmul.f32 %v437_v55, %v414_v48  ;;  %v445_v28 = vmul.f32 %v441_v56, %v414_v48  ;;  %v491_v59 = vmax.f32 %v483_v42, 0.0 }
  0xae   : > { %v452_v46 = vadd.f32 %v444_v33, %v402_v39  ;;  %v453_v47 = vadd.f32 %v445_v28, %v403_v40 }
  0xb0   : > { %v368_v62 = vpop.permute.xlu1 %367 }
  0xb1   : > { %v396_v35 = vmul.f32 %v387_v53, %v368_v62  ;;  %v397_v21 = vmul.f32 %v391_v54, %v368_v62  ;;  %v490_v53 = vmax.f32 %v482_v41, 0.0  ;;  %v480_v54 = vpop.permute.xlu0 %479 }
  0xb3   : > { %v404_v49 = vadd.f32 %v396_v35, %v354_v31  ;;  %v405_v50 = vadd.f32 %v397_v21, %v355_v32 }
  0xb5   : > { %v418_v13 = vpop.permute.xlu1 %417 }
  0xb6   : > { %v446_v43 = vmul.f32 %v437_v55, %v418_v13  ;;  %v447_v17 = vmul.f32 %v441_v56, %v418_v13 }
  0xb8   : > { %v454_v57 = vadd.f32 %v446_v43, %v404_v49  ;;  %v455_v58 = vadd.f32 %v447_v17, %v405_v50 }
  0xb9   : > { %v422_v34 = vpop.permute.xlu1 %421 }
  0xba   : > { %v448_v36 = vmul.f32 %v437_v55, %v422_v34  ;;  %v449_v19 = vmul.f32 %v441_v56, %v422_v34 }
  0xbc   : > { %v456_v44 = vadd.f32 %v448_v36, %v406_v37  ;;  %v457_v45 = vadd.f32 %v449_v19, %v407_v38 }
  0xbe   : > { %v470_v48 = vpop.permute.xlu1 %469  ;;  %v488_v60 = vadd.f32 %v480_v54, %v456_v44  ;;  %v489_v61 = vadd.f32 %v480_v54, %v457_v45 }
  0xbf   : > { %v484_v51 = vadd.f32 %v470_v48, %v452_v46  ;;  %v485_v52 = vadd.f32 %v470_v48, %v453_v47 }
  0xc0   : > { %v497_v5 = vmax.f32 %v489_v61, 0.0  ;;  %v496_v6 = vmax.f32 %v488_v60, 0.0 }
  0xc1   : > { %v492_v62 = vmax.f32 %v484_v51, 0.0  ;;  %v493_v63 = vmax.f32 %v485_v52, 0.0 }
  0xc2   : > { %v475_v55 = vpop.permute.xlu1 %474 }
  0xc3   : > { %v486_v56 = vadd.f32 %v475_v55, %v454_v57  ;;  %v487_v0 = vadd.f32 %v475_v55, %v455_v58  ;;  %v500_v1 = vpack.c.bf16 %v493_v63, %v491_v59  ;;  %v499_v2 = vpack.c.bf16 %v492_v62, %v490_v53 }
  0xc5   : > { %v494_v3 = vmax.f32 %v486_v56, 0.0  ;;  %v495_v4 = vmax.f32 %v487_v0, 0.0  ;;  %513 = vmatprep.subr.bf16.mxu0 %v500_v1 }
  0xc6   : > { %514 = vmatpush1.bf16.msra.mxu0 %v499_v2  ;;  %v507_v10 = vpop.permute.xlu1 %506 }
  0xc7   : > { %v502_v7 = vpack.c.bf16 %v497_v5, %v495_v4  ;;  %v501_v8 = vpack.c.bf16 %v496_v6, %v494_v3 }
  0xc9   : > { %515 = vmatprep.subr.bf16.mxu0 %v502_v7 }
  0xca   : > { %516 = vmatpush1.bf16.msra.mxu0 %v501_v8 }
  0xcd   : > { %657 = vmatmul.mubr.msk.bf16.vlgmr.msra.gmra.mrb[0].mxu0 %vm509_vm0, %v498_v9 }
 0x1a0   : > { %v547_v11 = vpop.f32.mrb[0].mxu0 }
 0x1a1   : > { %v548_v12 = vadd.f32 %v547_v11, %v507_v10  ;;  %v549_v13 = vpop.f32.mrb[1].mxu0 }
 0x1a2   : > { %v550_v16 = vadd.f32 %v549_v13, %v507_v10  ;;  %v551_v18 = vpop.f32.mrb[2].mxu0 }
 0x1a3   : > { %554 = vst [vmem:[%s242_s27] sm:$0xff] %v548_v12  ;;  %v552_v20 = vpop.f32.mrb[3].mxu0 }
 0x1a4   : > { %555 = vst [vmem:[%s242_s27 + $0x8] sm:$0xff] %v550_v16 }
 0x1a5   : > { %748 = shalt.err (!%p745_p5)
}
 0x1a6   : > { %s749_s14 = scalar_lea.hbm %s949_s9, 256  ;;  %s753_s17 = scalar_lea.hbm %s1001_s5, 512 }
 0x1a7   : > { %p750_p6 = scmp.ne.s32.totalorder %s949_s9, %s749_s14  ;;  %p754_p10 = scmp.lt.u32.totalorder %s949_s9, %s1001_s5 }
 0x1a8   : > { %p755_p11 = scmp.lt.u32.totalorder %s753_s17, %s749_s14  ;;  %p757_p13 = scmp.lt.u32.totalorder %s749_s14, %s949_s9 }
 0x1a9   : > { %p751_p7 = pnand %p750_p6, %p890_p4 }
 0x1aa   : > { %p756_p12 = por %p755_p11, %p754_p10 }
 0x1ab   : > { %p752_p9 = pneg %p751_p7 }
 0x1ac   : > { %p758_p0 = por %p757_p13, %p756_p12 }
 0x1ae   : > { %p759_p1 = pnand %p758_p0, %p752_p9 }
 0x1b0   : > { %762 = shalt.err (!%p759_p1)
}
 0x1b1   : > { %665 = dma.vmem_to_hbm [thread:$0]  (%p890_p4), %s951_s29, 256, %s949_s9, %s557_s21  }
 0x1b2 PF: > { %p671_p2 = scmp.ge.s32.totalorder %s813_s23, 2  ;;  %s585_s27 = sand.u32 1, %s793_s18  }
 0x1b3   : > { %s586_s7 = scalar_lea.sflag [#allocation3], %s585_s27 }
 0x1b4   : > { %p668_p3 = pnand %p671_p2, %p897_p8 }
 0x1b6   : > { %788 = dma.done.wait (!%p668_p3), %s586_s7, 256  }
 0x1b7   : > { %790 = vsyncadd (!%p668_p3), %s586_s7, 4294967040  ;;  %s18_s23 = sadd.s32 1, %s813_s23   ;;  %s1004_s18 = smov %s797_s19 }
 0x1b8   : > { %p15_p5 = scmp.ge.s32.totalorder %s18_s23, 4   ;;  %s1005_s19 = smov %s801_s20 }
 0x1b9   : > { %s1006_s20 = smov %s903_s6  ;;  %s1007_s21 = smov %s809_s22 }
 0x1ba   : > { %s1008_s22 = smov %s1010_s26  ;;  %17 = sbr.rel (!%p15_p5) target bundleno = 4 (0x4), region = 75 }
 0x1c1   :  { %591 = vsyncpa [#allocation3], 1 }
 0x1c2   :  { %593 = vsyncpa [#allocation3 + $0x1], 1 }

</bundles_post_ra>
